<compile_context>
chip_gen: v7x
topology: tpu7x:2x2x1
jax: 0.10.0
libtpu: 0.0.40
codegen_flags: <defaults>
</compile_context>

<pallas_src>
import jax
import jax.numpy as jnp
from jax.experimental import pallas as pl
from jax.experimental.pallas import tpu as pltpu

EMB_DIM = 128
HIDDEN1 = 128
HIDDEN2 = 64
OUTPUT_DIM = 64
BN_EPS = 1e-5
L2_EPS = 1e-12


def unet_decoder_kernel(x_ref,
                        w1_ref, sh1_ref,
                        w2_ref, sh2_ref,
                        w3_ref, sh3_ref,
                        mask_ref,
                        o_ref):
    # x: (tm2, 256) f32 = two original rows lane-packed; cast to bf16 in-kernel
    # (fused with the load -> no separate XLA cast pass over HBM).
    x = x_ref[...].astype(jnp.bfloat16)

    # layer 1: 1x1 conv == matmul (block-diag weights, BN scale pre-folded),
    # + additive BN shift, ReLU.  bf16 operands, f32 MXU accumulation.
    h = jnp.dot(x, w1_ref[...], preferred_element_type=jnp.float32) + sh1_ref[...]
    h = jnp.maximum(h, 0.0)

    # layer 2 (dropout = identity in eval mode)
    h = jnp.dot(h.astype(jnp.bfloat16), w2_ref[...],
                preferred_element_type=jnp.float32) + sh2_ref[...]
    h = jnp.maximum(h, 0.0)

    # layer 3 (no ReLU)
    h = jnp.dot(h.astype(jnp.bfloat16), w3_ref[...],
                preferred_element_type=jnp.float32) + sh3_ref[...]

    # F.normalize(p=2, dim=channels): per-64-lane-group L2 normalize.
    # Segmented sum-of-squares via MXU matmul with a block-diag ones mask
    # (group sums come back broadcast over each group's lanes), then
    # rsqrt(max(ss, eps^2)) * h  ==  h / max(||h||, eps)   (exact rewrite).
    hh = (h * h).astype(jnp.bfloat16)
    ss = jnp.dot(hh, mask_ref[...], preferred_element_type=jnp.float32)
    inv = jax.lax.rsqrt(jnp.maximum(ss, L2_EPS * L2_EPS))
    o_ref[...] = (h * inv).astype(o_ref.dtype)


def _fold_bn(w, b, gamma, beta, mean, var):
    """Fold conv bias + eval-mode BatchNorm into the weights + additive shift.

    y = scale * (x @ W.T + b - mean) + beta
      = x @ (W.T * scale) + (beta + (b - mean) * scale)
    """
    scale = gamma / jnp.sqrt(var + BN_EPS)                  # (Cout,)
    w_eff = w.T.astype(jnp.float32) * scale[None, :]        # (Cin, Cout) f32
    shift = beta + (b - mean) * scale                       # (Cout,)
    return w_eff, shift


def _blockdiag2(w):
    """[[W, 0], [0, W]] — lets one matmul process two lane-packed rows."""
    z = jnp.zeros_like(w)
    return jnp.concatenate(
        [jnp.concatenate([w, z], axis=1),
         jnp.concatenate([z, w], axis=1)], axis=0)


def unet_decoder_forward(x, params, *, tm=4096):
    """x: (B, N, emb_dim) float32  ->  (B, N, output_dim) float32."""
    B, N, Cin = x.shape
    assert Cin == EMB_DIM
    M = B * N

    rows = x.reshape(M, Cin)                    # free, contiguous
    if M % 2:                                   # rare edge case: single-row pad
        rows = jnp.pad(rows, ((0, 1), (0, 0)))
    M2 = rows.shape[0] // 2
    rows2 = rows.reshape(M2, 2 * Cin)           # free, contiguous row-pair pack

    # Packed-row tile: multiple of 8 sublanes, clamped to the problem size, and
    # capped so the grid keeps >= 2 steps (megacore sharding) when possible.
    tm2 = max(8, (tm // 2) // 8 * 8)
    tm2 = min(tm2, (M2 + 7) // 8 * 8)
    if M2 >= 16:
        tm2 = min(tm2, (pl.cdiv(M2, 2) + 7) // 8 * 8)
    grid = pl.cdiv(M2, tm2)                     # ragged last tile OK (masked)

    # Fold BN into weights, build block-diagonal (row-pair) operands.
    w1, sh1 = _fold_bn(params["w1"], params["b1"], params["g1"],
                       params["be1"], params["m1"], params["v1"])
    w2, sh2 = _fold_bn(params["w2"], params["b2"], params["g2"],
                       params["be2"], params["m2"], params["v2"])
    w3, sh3 = _fold_bn(params["w3"], params["b3"], params["g3"],
                       params["be3"], params["m3"], params["v3"])
    w1p = _blockdiag2(w1).astype(jnp.bfloat16)                  # (256, 256)
    w2p = _blockdiag2(w2).astype(jnp.bfloat16)                  # (256, 128)
    w3p = _blockdiag2(w3).astype(jnp.bfloat16)                  # (128, 128)
    sh1p = jnp.tile(sh1, 2)[None, :].astype(jnp.float32)        # (1, 256)
    sh2p = jnp.tile(sh2, 2)[None, :].astype(jnp.float32)        # (1, 128)
    sh3p = jnp.tile(sh3, 2)[None, :].astype(jnp.float32)        # (1, 128)
    mask = _blockdiag2(jnp.ones((OUTPUT_DIM, OUTPUT_DIM),
                                jnp.bfloat16))                  # (128, 128)

    full = lambda a: pl.BlockSpec(a.shape, lambda i: (0, 0))

    param_bytes = sum(int(a.size) * a.dtype.itemsize
                      for a in (w1p, sh1p, w2p, sh2p, w3p, sh3p, mask))
    cost = pl.CostEstimate(
        flops=2 * M2 * (2 * EMB_DIM * 2 * HIDDEN1
                        + 2 * HIDDEN1 * 2 * HIDDEN2
                        + 2 * HIDDEN2 * 2 * OUTPUT_DIM
                        + 2 * OUTPUT_DIM * 2 * OUTPUT_DIM),     # incl. mask matmul
        transcendentals=M2 * 2 * OUTPUT_DIM,
        bytes_accessed=(M2 * 2 * EMB_DIM * 4            # f32 input, single read
                        + M2 * 2 * OUTPUT_DIM * 4       # f32 output, single write
                        + param_bytes),
    )

    packed = pl.pallas_call(
        unet_decoder_kernel,
        out_shape=jax.ShapeDtypeStruct((M2, 2 * OUTPUT_DIM), jnp.float32),
        grid_spec=pltpu.PrefetchScalarGridSpec(
            num_scalar_prefetch=0,
            grid=(grid,),
            in_specs=[
                pl.BlockSpec((tm2, 2 * Cin), lambda i: (i, 0)),
                full(w1p), full(sh1p),
                full(w2p), full(sh2p),
                full(w3p), full(sh3p),
                full(mask),
            ],
            out_specs=pl.BlockSpec((tm2, 2 * OUTPUT_DIM), lambda i: (i, 0)),
        ),
        compiler_params=pltpu.CompilerParams(
            dimension_semantics=("parallel",)),
        cost_estimate=cost,
    )(rows2, w1p, sh1p, w2p, sh2p, w3p, sh3p, mask)

    # Undo the row-pair lane packing: free, contiguous reshape (no transpose).
    out = packed.reshape(2 * M2, OUTPUT_DIM)
    return out[:M].reshape(B, N, OUTPUT_DIM)


def init_params(key, emb_dim=EMB_DIM, output_dim=OUTPUT_DIM):
    """Deterministic synthetic parameters matching the nn.Module shapes."""
    layer_dims = [(HIDDEN1, emb_dim), (HIDDEN2, HIDDEN1), (output_dim, HIDDEN2)]
    params = {}
    keys = jax.random.split(key, 12)
    for idx, (cout, cin) in enumerate(layer_dims, start=1):
        kw, kb, kg, kbe, km, kv = jax.random.split(keys[idx], 6)
        params[f"w{idx}"] = 0.05 * jax.random.normal(kw, (cout, cin), jnp.float32)
        params[f"b{idx}"] = 0.01 * jax.random.normal(kb, (cout,), jnp.float32)
        params[f"g{idx}"] = 1.0 + 0.1 * jax.random.normal(kg, (cout,), jnp.float32)
        params[f"be{idx}"] = 0.05 * jax.random.normal(kbe, (cout,), jnp.float32)
        params[f"m{idx}"] = 0.02 * jax.random.normal(km, (cout,), jnp.float32)
        params[f"v{idx}"] = 1.0 + 0.1 * jax.nn.softplus(
            jax.random.normal(kv, (cout,), jnp.float32))
    return params


def reference_forward(x, params):
    """Pure-JAX f32 reference mirroring the PyTorch eval-mode forward."""
    def layer(h, i, relu):
        z = jnp.einsum("bnc,oc->bno", h, params[f"w{i}"]) + params[f"b{i}"]
        scale = params[f"g{i}"] / jnp.sqrt(params[f"v{i}"] + BN_EPS)
        z = (z - params[f"m{i}"]) * scale + params[f"be{i}"]
        return jnp.maximum(z, 0.0) if relu else z

    h = layer(x, 1, True)
    h = layer(h, 2, True)
    h = layer(h, 3, False)
    norm = jnp.sqrt(jnp.sum(h * h, axis=-1, keepdims=True))
    return h / jnp.maximum(norm, L2_EPS)


if __name__ == "__main__":
    key = jax.random.PRNGKey(0)
    kx, kp = jax.random.split(key)

    B, N = 2, 16
    x = jax.random.normal(kx, (B, N, EMB_DIM), jnp.float32)
    params = init_params(kp)

    fwd = jax.jit(unet_decoder_forward)
    out = jax.block_until_ready(fwd(x, params))
    ref = reference_forward(x, params)

    assert out.shape == (B, N, OUTPUT_DIM)
    max_err = jnp.max(jnp.abs(out - ref))
    # bf16 matmul operands (f32 accumulate) => relaxed tolerance vs f32 reference.
    assert jnp.allclose(out, ref, atol=3e-2, rtol=3e-2), f"max err {max_err}"

    print("KERNEL_OK")
</pallas_src>

<mosaic_0001>
module attributes {stable_mosaic.version = 11 : i64} {
  func.func @unet_decoder_kernel(%arg0: i32, %arg1: memref<8x256xf32, #tpu.memory_space<vmem>>, %arg2: memref<256x256xbf16, #tpu.memory_space<vmem>>, %arg3: memref<1x256xf32, #tpu.memory_space<vmem>>, %arg4: memref<256x128xbf16, #tpu.memory_space<vmem>>, %arg5: memref<1x128xf32, #tpu.memory_space<vmem>>, %arg6: memref<128x128xbf16, #tpu.memory_space<vmem>>, %arg7: memref<1x128xf32, #tpu.memory_space<vmem>>, %arg8: memref<128x128xbf16, #tpu.memory_space<vmem>>, %arg9: memref<8x128xf32, #tpu.memory_space<vmem>>) attributes {dimension_semantics = [#tpu.dimension_semantics<parallel>], iteration_bounds = array<i64: 2>, scalar_prefetch = 0 : i64, scratch_operands = 0 : i64, tpu.core_type = #tpu.core_type<tc>, window_params = [{transform_indices = @transform_0, window_bounds = array<i64: 8, 256>}, {pipeline_mode = #tpu.pipeline_mode<synchronous>, transform_indices = @transform_1, window_bounds = array<i64: 256, 256>}, {pipeline_mode = #tpu.pipeline_mode<synchronous>, transform_indices = @transform_2, window_bounds = array<i64: 1, 256>}, {pipeline_mode = #tpu.pipeline_mode<synchronous>, transform_indices = @transform_3, window_bounds = array<i64: 256, 128>}, {pipeline_mode = #tpu.pipeline_mode<synchronous>, transform_indices = @transform_4, window_bounds = array<i64: 1, 128>}, {pipeline_mode = #tpu.pipeline_mode<synchronous>, transform_indices = @transform_5, window_bounds = array<i64: 128, 128>}, {pipeline_mode = #tpu.pipeline_mode<synchronous>, transform_indices = @transform_6, window_bounds = array<i64: 1, 128>}, {pipeline_mode = #tpu.pipeline_mode<synchronous>, transform_indices = @transform_7, window_bounds = array<i64: 128, 128>}, {transform_indices = @transform_8, window_bounds = array<i64: 8, 128>}]} {
    %c0 = arith.constant 0 : index
    %c0_0 = arith.constant 0 : index
    %0 = vector.load %arg1[%c0, %c0_0] : memref<8x256xf32, #tpu.memory_space<vmem>>, vector<8x256xf32>
    %1 = arith.truncf %0 : vector<8x256xf32> to vector<8x256xbf16>
    %c0_1 = arith.constant 0 : index
    %c0_2 = arith.constant 0 : index
    %2 = vector.load %arg2[%c0_1, %c0_2] : memref<256x256xbf16, #tpu.memory_space<vmem>>, vector<256x256xbf16>
    %cst = arith.constant dense<0.000000e+00> : vector<8x256xf32>
    %3 = tpu.matmul %1, %2, %cst {dimension_numbers = #tpu.dot_dimension_numbers<[1], [0], [0], [1], [0, 0, 1, 1], [], []>} : vector<8x256xbf16>, vector<256x256xbf16>, vector<8x256xf32> -> vector<8x256xf32>
    %c0_3 = arith.constant 0 : index
    %c0_4 = arith.constant 0 : index
    %4 = vector.load %arg3[%c0_3, %c0_4] : memref<1x256xf32, #tpu.memory_space<vmem>>, vector<1x256xf32>
    %5 = vector.broadcast %4 : vector<1x256xf32> to vector<8x256xf32>
    %6 = arith.addf %3, %5 : vector<8x256xf32>
    %cst_5 = arith.constant 0.000000e+00 : f32
    %7 = vector.broadcast %cst_5 : f32 to vector<8x256xf32>
    %8 = arith.maximumf %6, %7 : vector<8x256xf32>
    %9 = arith.truncf %8 : vector<8x256xf32> to vector<8x256xbf16>
    %c0_6 = arith.constant 0 : index
    %c0_7 = arith.constant 0 : index
    %10 = vector.load %arg4[%c0_6, %c0_7] : memref<256x128xbf16, #tpu.memory_space<vmem>>, vector<256x128xbf16>
    %cst_8 = arith.constant dense<0.000000e+00> : vector<8x128xf32>
    %11 = tpu.matmul %9, %10, %cst_8 {dimension_numbers = #tpu.dot_dimension_numbers<[1], [0], [0], [1], [0, 0, 1, 1], [], []>} : vector<8x256xbf16>, vector<256x128xbf16>, vector<8x128xf32> -> vector<8x128xf32>
    %c0_9 = arith.constant 0 : index
    %c0_10 = arith.constant 0 : index
    %12 = vector.load %arg5[%c0_9, %c0_10] : memref<1x128xf32, #tpu.memory_space<vmem>>, vector<1x128xf32>
    %13 = vector.broadcast %12 : vector<1x128xf32> to vector<8x128xf32>
    %14 = arith.addf %11, %13 : vector<8x128xf32>
    %cst_11 = arith.constant 0.000000e+00 : f32
    %15 = vector.broadcast %cst_11 : f32 to vector<8x128xf32>
    %16 = arith.maximumf %14, %15 : vector<8x128xf32>
    %17 = arith.truncf %16 : vector<8x128xf32> to vector<8x128xbf16>
    %c0_12 = arith.constant 0 : index
    %c0_13 = arith.constant 0 : index
    %18 = vector.load %arg6[%c0_12, %c0_13] : memref<128x128xbf16, #tpu.memory_space<vmem>>, vector<128x128xbf16>
    %cst_14 = arith.constant dense<0.000000e+00> : vector<8x128xf32>
    %19 = tpu.matmul %17, %18, %cst_14 {dimension_numbers = #tpu.dot_dimension_numbers<[1], [0], [0], [1], [0, 0, 1, 1], [], []>} : vector<8x128xbf16>, vector<128x128xbf16>, vector<8x128xf32> -> vector<8x128xf32>
    %c0_15 = arith.constant 0 : index
    %c0_16 = arith.constant 0 : index
    %20 = vector.load %arg7[%c0_15, %c0_16] : memref<1x128xf32, #tpu.memory_space<vmem>>, vector<1x128xf32>
    %21 = vector.broadcast %20 : vector<1x128xf32> to vector<8x128xf32>
    %22 = arith.addf %19, %21 : vector<8x128xf32>
    %23 = arith.mulf %22, %22 : vector<8x128xf32>
    %24 = arith.truncf %23 : vector<8x128xf32> to vector<8x128xbf16>
    %c0_17 = arith.constant 0 : index
    %c0_18 = arith.constant 0 : index
    %25 = vector.load %arg8[%c0_17, %c0_18] : memref<128x128xbf16, #tpu.memory_space<vmem>>, vector<128x128xbf16>
    %cst_19 = arith.constant dense<0.000000e+00> : vector<8x128xf32>
    %26 = tpu.matmul %24, %25, %cst_19 {dimension_numbers = #tpu.dot_dimension_numbers<[1], [0], [0], [1], [0, 0, 1, 1], [], []>} : vector<8x128xbf16>, vector<128x128xbf16>, vector<8x128xf32> -> vector<8x128xf32>
    %cst_20 = arith.constant 1.000000e-24 : f32
    %27 = vector.broadcast %cst_20 : f32 to vector<8x128xf32>
    %28 = arith.maximumf %26, %27 : vector<8x128xf32>
    %29 = math.rsqrt %28 : vector<8x128xf32>
    %30 = arith.mulf %22, %29 : vector<8x128xf32>
    %c0_21 = arith.constant 0 : index
    %c0_22 = arith.constant 0 : index
    %31 = vector.load %arg9[%c0_21, %c0_22] : memref<8x128xf32, #tpu.memory_space<vmem>>, vector<8x128xf32>
    tpu.vector_store %arg9[%c0_21, %c0_22], %30 {strides = array<i32>} : memref<8x128xf32, #tpu.memory_space<vmem>>, vector<8x128xf32>,
    return
  }
  func.func @transform_0(%arg0: i32) -> (i32, i32) {
    %c0_i32 = arith.constant 0 : i32
    %c0_i32_0 = arith.constant 0 : i32
    return %arg0, %c0_i32 : i32, i32
  }
  func.func @transform_1(%arg0: i32) -> (i32, i32) {
    %c0_i32 = arith.constant 0 : i32
    %c0_i32_0 = arith.constant 0 : i32
    %c0_i32_1 = arith.constant 0 : i32
    return %c0_i32, %c0_i32_0 : i32, i32
  }
  func.func @transform_2(%arg0: i32) -> (i32, i32) {
    %c0_i32 = arith.constant 0 : i32
    %c0_i32_0 = arith.constant 0 : i32
    %c0_i32_1 = arith.constant 0 : i32
    return %c0_i32, %c0_i32_0 : i32, i32
  }
  func.func @transform_3(%arg0: i32) -> (i32, i32) {
    %c0_i32 = arith.constant 0 : i32
    %c0_i32_0 = arith.constant 0 : i32
    %c0_i32_1 = arith.constant 0 : i32
    return %c0_i32, %c0_i32_0 : i32, i32
  }
  func.func @transform_4(%arg0: i32) -> (i32, i32) {
    %c0_i32 = arith.constant 0 : i32
    %c0_i32_0 = arith.constant 0 : i32
    %c0_i32_1 = arith.constant 0 : i32
    return %c0_i32, %c0_i32_0 : i32, i32
  }
  func.func @transform_5(%arg0: i32) -> (i32, i32) {
    %c0_i32 = arith.constant 0 : i32
    %c0_i32_0 = arith.constant 0 : i32
    %c0_i32_1 = arith.constant 0 : i32
    return %c0_i32, %c0_i32_0 : i32, i32
  }
  func.func @transform_6(%arg0: i32) -> (i32, i32) {
    %c0_i32 = arith.constant 0 : i32
    %c0_i32_0 = arith.constant 0 : i32
    %c0_i32_1 = arith.constant 0 : i32
    return %c0_i32, %c0_i32_0 : i32, i32
  }
  func.func @transform_7(%arg0: i32) -> (i32, i32) {
    %c0_i32 = arith.constant 0 : i32
    %c0_i32_0 = arith.constant 0 : i32
    %c0_i32_1 = arith.constant 0 : i32
    return %c0_i32, %c0_i32_0 : i32, i32
  }
  func.func @transform_8(%arg0: i32) -> (i32, i32) {
    %c0_i32 = arith.constant 0 : i32
    %c0_i32_0 = arith.constant 0 : i32
    return %arg0, %c0_i32 : i32, i32
  }
}

</mosaic_0001>

<bundles_post_ra>
// kernel: tile.23
= control target key start
LH: loop header
LB: loop body
LE: loop exit
PB: predicated region body
PF: predicated region fallthrough
CT: control target
= control target key end

     0   :  { %s22_s0 = inlined_call_operand.vmem [shape: f32[64], index: 0, kind: input, shape index: {}]   ;;  %s23_s1 = inlined_call_operand.vmem [shape: f32[2,64], index: 1, kind: output, shape index: {}]  }
   0x1   :  { %v4_v0 = vld [vmem:[%s22_s0] ss:$0 sm:$0xff] }
   0x2   :  { %5 = vst [vmem:[%s23_s1] sm:$0x3] %v4_v0 }

// kernel: tile.24
= control target key start
LH: loop header
LB: loop body
LE: loop exit
PB: predicated region body
PF: predicated region fallthrough
CT: control target
= control target key end

     0   :  { %vm7_vm0 = vcmask 523264   ;;  %vm13_vm1 = vcmask 1048064   ;;  %s39_s0 = inlined_call_operand.vmem [shape: f32[2,64], index: 0, kind: input, shape index: {}]   ;;  %s40_s1 = inlined_call_operand.vmem [shape: f32[1,128], index: 1, kind: output, shape index: {}]  }
   0x1   :  { %v4_v0 = vld [vmem:[%s39_s0] sm:$0x3]  ;;  %s22_s0 = smov 64  }
   0x2   :  { %5 = vst [vmem:[#allocation1] sm:$0x3] %v4_v0 }
   0x9   :  { %v10_v1 = vld [vmem:[#allocation1 + $0x1] sm:$0x1]   ;;  %v6_v2 = vld [vmem:[#allocation1] sm:$0x1]  }
   0xa   :  { %11 = vrot.lane.b32.xlu0 %v10_v1, %s22_s0  ;;  %8 = vst.msk [vmem:[#allocation0] sm:$0x1] %vm7_vm0, %v6_v2  }
  0x7c   :  { %v12_v3 = vpop.permute.xlu0 %11  }
  0x7d   :  { %14 = vst.msk [vmem:[#allocation0] sm:$0x1] %vm13_vm1, %v12_v3  }
  0x84   :  { %v18_v4 = vld [vmem:[#allocation0] sm:$0x1] }
  0x85   :  { %20 = vst [vmem:[%s40_s1] sm:$0x1] %v18_v4 }

// kernel: tile.18
= control target key start
LH: loop header
LB: loop body
LE: loop exit
PB: predicated region body
PF: predicated region fallthrough
CT: control target
= control target key end

     0   :  { %s22_s0 = inlined_call_operand.vmem [shape: f32[128], index: 0, kind: input, shape index: {}]   ;;  %s23_s1 = inlined_call_operand.vmem [shape: f32[2,128], index: 1, kind: output, shape index: {}]  }
   0x1   :  { %v4_v0 = vld [vmem:[%s22_s0] ss:$0 sm:$0xff] }
   0x2   :  { %5 = vst [vmem:[%s23_s1] sm:$0x3] %v4_v0 }

// kernel: unet_decoder_forward.1
= control target key start
LH: loop header
LB: loop body
LE: loop exit
PB: predicated region body
PF: predicated region fallthrough
CT: control target
= control target key end

     0   :  { %s1313_s27 = smov 0   ;;  %s1557_s0 = inlined_call_operand.vmem [shape: f32[16,256], index: 0, kind: input, shape index: {}]   ;;  %s1558_s1 = inlined_call_operand.vmem [shape: bf16[256,256], index: 1, kind: input, shape index: {}]   ;;  %s1559_s2 = inlined_call_operand.vmem [shape: f32[1,256], index: 2, kind: input, shape index: {}]   ;;  %s1560_s3 = inlined_call_operand.vmem [shape: bf16[256,128], index: 3, kind: input, shape index: {}]   ;;  %s1561_s4 = inlined_call_operand.vmem [shape: f32[1,128], index: 4, kind: input, shape index: {}]   ;;  %s1562_s5 = inlined_call_operand.vmem [shape: bf16[128,128], index: 5, kind: input, shape index: {}]   ;;  %s1563_s6 = inlined_call_operand.vmem [shape: f32[1,128], index: 6, kind: input, shape index: {}]   ;;  %s1564_s7 = inlined_call_operand.vmem [shape: bf16[128,128], index: 7, kind: input, shape index: {}]   ;;  %s1565_s8 = inlined_call_operand.vmem [shape: f32[16,128], index: 8, kind: output, shape index: {}]  }
   0x1 LB: > { %s1009_s28 = sadd.s32 4294967295, %s1264_s27   ;;  %p1013_p0 = scmp.ge.s32.totalorder %s1264_s27, 1  ;;  %s1264_s27 = sphi %s1313_s27, %s18_s27  }
   0x2   : > { %p262_p1 = scmp.lt.s32.totalorder %s1264_s27, 3 }
   0x4   : > { %p263_p2 = pnand %p1013_p0, %p262_p1 }
   0x5   : > { %v1176_v0 = vld [vmem:[%s1558_s1 + $0x4] ss:$8 sps:$4 sm:$0xff] (!%p263_p2)   ;;  %v1178_v1 = vld [vmem:[%s1558_s1] ss:$8 sps:$4 sm:$0xff] (!%p263_p2)   ;;  %v1179_v2 = vld [vmem:[%s1558_s1 + $0x14] ss:$8 sps:$4 sm:$0xff] (!%p263_p2)   ;;  %v343_v53 = vlaneseq (!%p263_p2) }
   0x6   : > { %266 = sbr.rel (%p263_p2) target bundleno = 957 (0x3bd), region = 52  ;;  %513 = vmatprep.subr.bf16.mxu0 (!%p263_p2), %v1176_v0  ;;  %v1181_v3 = vld [vmem:[%s1558_s1 + $0x10] ss:$8 sps:$4 sm:$0xff] (!%p263_p2)   ;;  %v1182_v4 = vld [vmem:[%s1558_s1 + $0x24] ss:$8 sps:$4 sm:$0xff] (!%p263_p2)   ;;  %p295_p3 = scmp.lt.s32.totalorder (!%p263_p2), %s1009_s28, 1 }
   0x7   : > { %514 = vmatpush1.bf16.msra.mxu0 (!%p263_p2), %v1178_v1  ;;  %v1184_v5 = vld [vmem:[%s1558_s1 + $0x20] ss:$8 sps:$4 sm:$0xff] (!%p263_p2)   ;;  %v1185_v6 = vld [vmem:[%s1558_s1 + $0x34] ss:$8 sps:$4 sm:$0xff] (!%p263_p2)   ;;  %v1187_v7 = vld [vmem:[%s1558_s1 + $0x30] ss:$8 sps:$4 sm:$0xff] (!%p263_p2)  }
   0x8   : > { %515 = vmatprep.subr.bf16.mxu0 (!%p263_p2), %v1179_v2  ;;  %v1188_v8 = vld [vmem:[%s1558_s1 + $0x44] ss:$8 sps:$4 sm:$0xff] (!%p263_p2)   ;;  %v1190_v9 = vld [vmem:[%s1558_s1 + $0x40] ss:$8 sps:$4 sm:$0xff] (!%p263_p2)   ;;  %v1191_v10 = vld [vmem:[%s1558_s1 + $0x54] ss:$8 sps:$4 sm:$0xff] (!%p263_p2)  }
   0x9   : > { %v1193_v11 = vld [vmem:[%s1558_s1 + $0x50] ss:$8 sps:$4 sm:$0xff] (!%p263_p2)   ;;  %v1194_v12 = vld [vmem:[%s1558_s1 + $0x64] ss:$8 sps:$4 sm:$0xff] (!%p263_p2)   ;;  %v1196_v13 = vld [vmem:[%s1558_s1 + $0x60] ss:$8 sps:$4 sm:$0xff] (!%p263_p2)  }
   0xa   : > { %v1197_v15 = vld [vmem:[%s1558_s1 + $0x74] ss:$8 sps:$4 sm:$0xff] (!%p263_p2)   ;;  %v1224_v17 = vld [vmem:[%s1560_s3 + $0x40] sm:$0xff] (!%p263_p2)   ;;  %v1226_v19 = vld [vmem:[%s1560_s3 + $0x48] sm:$0xff] (!%p263_p2)   ;;  %v1266_v52 = vmov (!%p263_p2), 0.0   ;;  %v344_v54 = vshrl.u32 (!%p263_p2), %v343_v53, 7 }
   0xb   : > { %516 = vmatpush1.bf16.msra.mxu0 (!%p263_p2), %v1181_v3  ;;  %v1225_v18 = vld [vmem:[%s1560_s3] sm:$0xff] (!%p263_p2)   ;;  %v1199_v20 = vld [vmem:[%s1558_s1 + $0x70] ss:$8 sps:$4 sm:$0xff] (!%p263_p2)   ;;  %1086 = vmatprep.subr.bf16.mxu1 (!%p263_p2), %v1224_v17  ;;  %v1227_v21 = vld [vmem:[%s1560_s3 + $0x8] sm:$0xff] (!%p263_p2)   ;;  %vm1267_vm0 = vmmov (!%p263_p2), 0  }
   0xc   : > { %517 = vmatprep.subr.bf16.mxu0 (!%p263_p2), %v1182_v4  ;;  %1087 = vmatpush3.bf16.msra.mxu1 (!%p263_p2), %v1225_v18  ;;  %v1228_v22 = vld [vmem:[%s1560_s3 + $0x50] sm:$0xff] (!%p263_p2)   ;;  %v1200_v23 = vld [vmem:[%s1558_s1 + $0x84] ss:$8 sps:$4 sm:$0xff] (!%p263_p2)   ;;  %v1202_v24 = vld [vmem:[%s1558_s1 + $0x80] ss:$8 sps:$4 sm:$0xff] (!%p263_p2)   ;;  %v345_v55 = vsub.s32 (!%p263_p2), 0, %v344_v54 }
   0xd   : > { %s1567_s28 = smov (!%p295_p3, %s1009_s28), 1  ;;  %1088 = vmatprep.subr.bf16.mxu1 %v1226_v19  ;;  %v1229_v25 = vld [vmem:[%s1560_s3 + $0x10] sm:$0xff]   ;;  %v1230_v26 = vld [vmem:[%s1560_s3 + $0x58] sm:$0xff]   ;;  %v1206_v30 = vld [vmem:[%s1558_s1 + $0xa4] ss:$8 sps:$4 sm:$0xff]   ;;  %v349_v57 = vsub.s32 1, %v344_v54 }
   0xe   : > { %s1085_s29 = sshll.u32 %s1567_s28, 4  ;;  %v1203_v27 = vld [vmem:[%s1558_s1 + $0x94] ss:$8 sps:$4 sm:$0xff]   ;;  %v1205_v28 = vld [vmem:[%s1558_s1 + $0x90] ss:$8 sps:$4 sm:$0xff]   ;;  %v1232_v31 = vld [vmem:[%s1560_s3 + $0x60] sm:$0xff]  }
   0xf   : > { %518 = vmatpush1.bf16.msra.mxu0 %v1184_v5  ;;  %s1360_s12 = scalar_lea.vmem %s1557_s0, %s1085_s29  ;;  %v1231_v29 = vld [vmem:[%s1560_s3 + $0x18] sm:$0xff]   ;;  %v1233_v32 = vld [vmem:[%s1560_s3 + $0x20] sm:$0xff]   ;;  %v1234_v34 = vld [vmem:[%s1560_s3 + $0x68] sm:$0xff]   ;;  %s1016_s30 = sshll.u32 %s1567_s28, 3 }
  0x10   : > { %519 = vmatprep.subr.bf16.mxu0 %v1185_v6  ;;  %v306_v14 = vld [vmem:[%s1360_s12 + $0x8] sm:$0xff]  ;;  %1089 = vmatpush3.bf16.msra.mxu1 %v1227_v21  ;;  %v1209_v35 = vld [vmem:[%s1558_s1 + $0xb4] ss:$8 sps:$4 sm:$0xff]   ;;  %v1211_v37 = vld [vmem:[%s1558_s1 + $0xb0] ss:$8 sps:$4 sm:$0xff]   ;;  %s303_s10 = scalar_lea.vmem %s1565_s8, %s1016_s30 }
  0x11   : > { %v308_v16 = vpack.c.bf16 %v306_v14, %v306_v14  ;;  %1090 = vmatprep.subr.bf16.mxu1 %v1228_v22  ;;  %v1208_v33 = vld [vmem:[%s1558_s1 + $0xa0] ss:$8 sps:$4 sm:$0xff]   ;;  %v1212_v38 = vld [vmem:[%s1558_s1 + $0xc4] ss:$8 sps:$4 sm:$0xff]   ;;  %v1215_v40 = vld [vmem:[%s1558_s1 + $0xd4] ss:$8 sps:$4 sm:$0xff]  }
  0x12   : > { %v1235_v36 = vld [vmem:[%s1560_s3 + $0x28] sm:$0xff]   ;;  %v1217_v41 = vld [vmem:[%s1558_s1 + $0xd0] ss:$8 sps:$4 sm:$0xff]   ;;  %v1221_v44 = vld [vmem:[%s1558_s1 + $0xf4] ss:$8 sps:$4 sm:$0xff]  }
  0x13   : > { %520 = vmatpush1.bf16.msra.mxu0 %v1187_v7  ;;  %545 = vmatprep.mubr.bf16.mxu0 %v308_v16  ;;  %v1214_v39 = vld [vmem:[%s1558_s1 + $0xc0] ss:$8 sps:$4 sm:$0xff]   ;;  %v1218_v42 = vld [vmem:[%s1558_s1 + $0xe4] ss:$8 sps:$4 sm:$0xff]   ;;  %v1223_v45 = vld [vmem:[%s1558_s1 + $0xf0] ss:$8 sps:$4 sm:$0xff]  }
  0x14   : > { %521 = vmatprep.subr.bf16.mxu0 %v1188_v8  ;;  %1091 = vmatpush3.bf16.msra.mxu1 %v1229_v25  ;;  %v1220_v43 = vld [vmem:[%s1558_s1 + $0xe0] ss:$8 sps:$4 sm:$0xff]   ;;  %v1236_v48 = vld [vmem:[%s1560_s3 + $0x70] sm:$0xff]   ;;  %v1238_v50 = vld [vmem:[%s1560_s3 + $0x78] sm:$0xff]  }
  0x15   : > { %1092 = vmatprep.subr.bf16.mxu1 %v1230_v26  ;;  %v305_v46 = vld [vmem:[%s1360_s12] sm:$0xff]  ;;  %v1237_v49 = vld [vmem:[%s1560_s3 + $0x30] sm:$0xff]   ;;  %v1239_v51 = vld [vmem:[%s1560_s3 + $0x38] sm:$0xff]  }
  0x16   : > { %v307_v47 = vpack.c.bf16 %v305_v46, %v305_v46  ;;  %v341_v56 = vld [vmem:[%s1559_s2] sm:$0x3]  ;;  %v1241_v7 = vld [vmem:[%s1562_s5 + $0x8] sm:$0xff]   ;;  %v1242_v8 = vld [vmem:[%s1562_s5 + $0x10] sm:$0xff]  }
  0x17   : > { %522 = vmatpush1.bf16.msra.mxu0 %v1190_v9  ;;  %v346_v58 = vrot.slane %v341_v56, %v345_v55  ;;  %v350_v59 = vrot.slane %v341_v56, %v349_v57  ;;  %v1240_v5 = vld [vmem:[%s1562_s5] sm:$0xff]   ;;  %v1243_v9 = vld [vmem:[%s1562_s5 + $0x18] sm:$0xff]   ;;  %v1250_v16 = vld [vmem:[%s1564_s7 + $0x10] sm:$0xff]  }
  0x18   : > { %523 = vmatprep.subr.bf16.mxu0 %v1191_v10  ;;  %1093 = vmatpush3.bf16.msra.mxu1 %v1231_v29  ;;  %v1244_v10 = vld [vmem:[%s1562_s5 + $0x20] sm:$0xff]   ;;  %v1251_v17 = vld [vmem:[%s1564_s7 + $0x18] sm:$0xff]   ;;  %v1253_v19 = vld [vmem:[%s1564_s7 + $0x28] sm:$0xff]  }
  0x19   : > { %1094 = vmatprep.subr.bf16.mxu1 %v1232_v31  ;;  %v1248_v14 = vld [vmem:[%s1564_s7] sm:$0xff]   ;;  %v1254_v29 = vld [vmem:[%s1564_s7 + $0x30] sm:$0xff]  }
  0x1a   : > { %v1252_v18 = vld [vmem:[%s1564_s7 + $0x20] sm:$0xff]  }
  0x1b   : > { %524 = vmatpush1.bf16.msra.mxu0 %v1193_v11  ;;  %v1245_v11 = vld [vmem:[%s1562_s5 + $0x28] sm:$0xff]   ;;  %v1049_v21 = vld [vmem:[%s1561_s4] ss:$0 sm:$0xff] }
  0x1c   : > { %525 = vmatprep.subr.bf16.mxu0 %v1194_v12  ;;  %1095 = vmatpush3.bf16.msra.mxu1 %v1233_v32  ;;  %v1246_v12 = vld [vmem:[%s1562_s5 + $0x30] sm:$0xff]   ;;  %v1066_v31 = vld [vmem:[%s1563_s6] ss:$0 sm:$0xff] }
  0x1d   : > { %1096 = vmatprep.subr.bf16.mxu1 %v1234_v34 }
  0x1f   : > { %526 = vmatpush1.bf16.msra.mxu0 %v1196_v13  ;;  %v1247_v13 = vld [vmem:[%s1562_s5 + $0x38] sm:$0xff]  }
  0x20   : > { %527 = vmatprep.subr.bf16.mxu0 %v1197_v15  ;;  %1097 = vmatpush3.bf16.msra.mxu1 %v1235_v36  ;;  %v1249_v15 = vld [vmem:[%s1564_s7 + $0x8] sm:$0xff]  }
  0x21   : > { %1098 = vmatprep.subr.bf16.mxu1 %v1236_v48 }
  0x23   : > { %528 = vmatpush1.bf16.msra.mxu0 %v1199_v20 }
  0x24   : > { %529 = vmatprep.subr.bf16.mxu0 %v1200_v23  ;;  %1099 = vmatpush3.bf16.msra.mxu1 %v1237_v49 }
  0x25   : > { %1100 = vmatprep.subr.bf16.mxu1 %v1238_v50 }
  0x27   : > { %530 = vmatpush1.bf16.msra.mxu0 %v1202_v24 }
  0x28   : > { %531 = vmatprep.subr.bf16.mxu0 %v1203_v27  ;;  %1101 = vmatpush3.bf16.msra.mxu1 %v1239_v51 }
  0x29   : > { %1126 = vmatprep.subr.bf16.mxu1 %v1266_v52 }
  0x2b   : > { %532 = vmatpush1.bf16.msra.mxu0 %v1205_v28 }
  0x2c   : > { %533 = vmatprep.subr.bf16.mxu0 %v1206_v30  ;;  %v1255_v30 = vld [vmem:[%s1564_s7 + $0x38] sm:$0xff]  }
  0x2f   : > { %534 = vmatpush1.bf16.msra.mxu0 %v1208_v33 }
  0x30   : > { %535 = vmatprep.subr.bf16.mxu0 %v1209_v35 }
  0x33   : > { %536 = vmatpush1.bf16.msra.mxu0 %v1211_v37 }
  0x34   : > { %537 = vmatprep.subr.bf16.mxu0 %v1212_v38 }
  0x37   : > { %538 = vmatpush1.bf16.msra.mxu0 %v1214_v39 }
  0x38   : > { %539 = vmatprep.subr.bf16.mxu0 %v1215_v40 }
  0x3b   : > { %540 = vmatpush1.bf16.msra.mxu0 %v1217_v41 }
  0x3c   : > { %541 = vmatprep.subr.bf16.mxu0 %v1218_v42 }
  0x3f   : > { %542 = vmatpush1.bf16.msra.mxu0 %v1220_v43 }
  0x40   : > { %543 = vmatprep.subr.bf16.mxu0 %v1221_v44 }
  0x43   : > { %544 = vmatpush1.bf16.msra.mxu0 %v1223_v45 }
  0x44   : > { %1146 = vmatprep.subr.bf16.mxu0 %v1266_v52 }
  0x46   : > { %546 = vmatmul.mubr.bf16.vlgmr.msra.gmra.mrb[0].mxu0 %v307_v47 }
  0x47   : > { %1162 = vmatprep.mubr.msk.bf16.mxu0 %vm1267_vm0, %v1266_v52  ;;  %1147 = vmatpush3.bf16.msra.mxu0 %v1248_v14 }
  0x48   : > { %1148 = vmatprep.subr.bf16.mxu0 %v1266_v52 }
  0x4b   : > { %1149 = vmatpush3.bf16.msra.mxu0 %v1249_v15 }
  0x4c   : > { %1150 = vmatprep.subr.bf16.mxu0 %v1266_v52 }
  0x4f   : > { %1151 = vmatpush3.bf16.msra.mxu0 %v1250_v16 }
  0x50   : > { %1152 = vmatprep.subr.bf16.mxu0 %v1266_v52 }
  0x53   : > { %1153 = vmatpush3.bf16.msra.mxu0 %v1251_v17 }
  0x54   : > { %1154 = vmatprep.subr.bf16.mxu0 %v1266_v52 }
  0x57   : > { %1155 = vmatpush3.bf16.msra.mxu0 %v1252_v18 }
  0x58   : > { %1156 = vmatprep.subr.bf16.mxu0 %v1266_v52 }
  0x5b   : > { %1157 = vmatpush3.bf16.msra.mxu0 %v1253_v19 }
  0x5c   : > { %1158 = vmatprep.subr.bf16.mxu0 %v1266_v52 }
  0x5f   : > { %1159 = vmatpush3.bf16.msra.mxu0 %v1254_v29 }
  0x60   : > { %1160 = vmatprep.subr.bf16.mxu0 %v1266_v52 }
  0x63   : > { %1161 = vmatpush3.bf16.msra.mxu0 %v1255_v30 }
 0x119   : > { %v547_v60 = vpop.f32.mrb[0].mxu0 }
 0x11a   : > { %v548_v61 = vadd.f32 %v547_v60, %v346_v58  ;;  %v549_v62 = vpop.f32.mrb[1].mxu0 }
 0x11b   : > { %v550_v63 = vadd.f32 %v549_v62, %v350_v59  ;;  %v551_v0 = vpop.f32.mrb[2].mxu0 }
 0x11c   : > { %v554_v1 = vmax.f32 %v548_v61, 0.0  ;;  %v552_v2 = vpop.f32.mrb[3].mxu0 }
 0x11d   : > { %v555_v3 = vmax.f32 %v550_v63, 0.0 }
 0x11e   : > { %v556_v6 = vpack.c.bf16 %v554_v1, %v554_v1 }
 0x11f   : > { %v557_v4 = vpack.c.bf16 %v555_v3, %v555_v3 }
 0x121   : > { %725 = vmatprep.mubr.bf16.mxu1 %v557_v4 }
 0x122   : > { %726 = vmatmul.mubr.bf16.vlgmr.msra.gmra.mrb[0].mxu1 %v556_v6 }
 0x123   : > { %1127 = vmatpush3.bf16.msra.mxu1 %v1240_v5  ;;  %1142 = vmatprep.mubr.msk.bf16.mxu1 %vm1267_vm0, %v1266_v52 }
 0x124   : > { %1128 = vmatprep.subr.bf16.mxu1 %v1266_v52 }
 0x127   : > { %1129 = vmatpush3.bf16.msra.mxu1 %v1241_v7 }
 0x128   : > { %1130 = vmatprep.subr.bf16.mxu1 %v1266_v52 }
 0x12b   : > { %1131 = vmatpush3.bf16.msra.mxu1 %v1242_v8 }
 0x12c   : > { %1132 = vmatprep.subr.bf16.mxu1 %v1266_v52 }
 0x12f   : > { %1133 = vmatpush3.bf16.msra.mxu1 %v1243_v9 }
 0x130   : > { %1134 = vmatprep.subr.bf16.mxu1 %v1266_v52 }
 0x133   : > { %1135 = vmatpush3.bf16.msra.mxu1 %v1244_v10 }
 0x134   : > { %1136 = vmatprep.subr.bf16.mxu1 %v1266_v52 }
 0x137   : > { %1137 = vmatpush3.bf16.msra.mxu1 %v1245_v11 }
 0x138   : > { %1138 = vmatprep.subr.bf16.mxu1 %v1266_v52 }
 0x13b   : > { %1139 = vmatpush3.bf16.msra.mxu1 %v1246_v12 }
 0x13c   : > { %1140 = vmatprep.subr.bf16.mxu1 %v1266_v52 }
 0x13f   : > { %1141 = vmatpush3.bf16.msra.mxu1 %v1247_v13 }
 0x1f5   : > { %v1102_v20 = vpop.f32.mrb[0].mxu1 }
 0x1f6   : > { %v1103_v22 = vpop.f32.mrb[1].mxu1 }
 0x1f7   : > { %v1104_v23 = vadd.f32 %v1103_v22, %v1102_v20  ;;  %v1105_v24 = vpop.f32.mrb[2].mxu1 }
 0x1f8   : > { %v1106_v25 = vpop.f32.mrb[3].mxu1 }
 0x1f9   : > { %v728_v26 = vadd.f32 %v1104_v23, %v1049_v21 }
 0x1fb   : > { %v733_v27 = vmax.f32 %v728_v26, 0.0 }
 0x1fd   : > { %v734_v28 = vpack.c.bf16 %v733_v27, %v733_v27 }
 0x1ff   : > { %1143 = vmatmul.mubr.bf16.vlgmr.msra.gmra.mrb[4].mxu1 %v734_v28 }
 0x2d2   : > { %v840_v32 = vpop.f32.mrb[4].mxu1 }
 0x2d3   : > { %v841_v33 = vadd.f32 %v1066_v31, %v840_v32  ;;  %v1144_v34 = vpop.f32.mrb[5].mxu1 }
 0x2d4   : > { %v843_v35 = vpop.f32.mrb[6].mxu1 }
 0x2d5   : > { %v846_v36 = vmul.f32 %v841_v33, %v841_v33  ;;  %v1145_v37 = vpop.f32.mrb[7].mxu1 }
 0x2d7   : > { %v847_v38 = vpack.c.bf16 %v846_v36, %v846_v36 }
 0x2d9   : > { %1163 = vmatmul.mubr.bf16.vlgmr.msra.gmra.mrb[4].mxu0 %v847_v38 }
 0x3ac   : > { %v946_v39 = vpop.f32.mrb[4].mxu0 }
 0x3ad   : > { %v952_v40 = vmax.f32 %v946_v39, 1e-24  ;;  %v1164_v41 = vpop.f32.mrb[5].mxu0 }
 0x3ae   : > { %v949_v42 = vpop.f32.mrb[6].mxu0 }
 0x3af   : > { %1256 = vrsqrt.f32 %v952_v40  ;;  %v1165_v43 = vpop.f32.mrb[7].mxu0 }
 0x3b9   : > { %v1257_v44 = vpop.eup %1256 }
 0x3ba   : > { %v954_v45 = vmul.f32 %v1257_v44, %v841_v33 }
 0x3bc   : > { %955 = vst [vmem:[%s303_s10] sm:$0xff] %v954_v45 }
 0x3bd PF: > { %s18_s27 = sadd.s32 1, %s1264_s27  }
 0x3be   : > { %p15_p4 = scmp.ge.s32.totalorder %s18_s27, 4  }
 0x3c0   :  { %17 = sbr.rel (!%p15_p4) target bundleno = 1 (0x1), region = 82 }

</bundles_post_ra>
